<compile_context>
chip_gen: v5e
topology: v5e:2x2
jax: 0.10.0
libtpu: 0.0.40
codegen_flags: <defaults>
</compile_context>

<pallas_src>
import functools
import math

import jax
import jax.numpy as jnp
from jax.experimental import pallas as pl
from jax.experimental.pallas import tpu as pltpu


def _round_up(a: int, b: int) -> int:
    return (a + b - 1) // b * b


def _vmem_capacity_bytes() -> int:
    try:
        cap = int(getattr(pltpu.get_tpu_info(), "vmem_capacity_bytes"))
        if cap > 0:
            return cap
    except Exception:
        pass
    return 64 * 1024 * 1024  # conservative default (v7x per-core VMEM)


def _cheb_kernel(*refs, K: int, TM: int, use_bias: bool):
    """One grid point = (recurrence step kk, row tile i).

    Scratch slot j holds Tx_{j+1} (bf16); Tx_0 is read directly from x.
    The output matmuls run only on the last recurrence pass.
    """
    it = iter(refs)
    x_ref = next(it)                       # [N_pad, F_in] bf16, resident
    l_ref = next(it) if K > 1 else None    # [TM, N_pad] bf16 (slab or full L)
    w_ref = next(it)                       # [K, F_in, F_out_p] bf16, resident
    b_ref = next(it) if use_bias else None # [1, F_out_p] f32
    out_ref = next(it)                     # [TM, F_out_p] f32
    tx_ref = next(it) if K > 1 else None   # [K-1, N_pad, F_in] bf16 scratch

    kk = pl.program_id(0)                  # recurrence step (produces Tx_{kk+1})
    i = pl.program_id(1)                   # row tile
    row0 = pl.multiple_of(i * TM, TM)
    rows = pl.ds(row0, TM)
    n_steps = max(K - 1, 1)

    if K > 1:
        def recurrence(step):
            k = step + 1                   # Chebyshev order being produced
            # Full [N_pad, F_in] bf16 RHS: x for k==1, else scratch slot k-2.
            prev_full = x_ref[...] if k == 1 else tx_ref[k - 2]
            t = jnp.dot(l_ref[...], prev_full,
                        preferred_element_type=jnp.float32)
            if k >= 2:
                sub = x_ref[rows, :] if k == 2 else tx_ref[k - 3, rows, :]
                t = 2.0 * t - sub.astype(jnp.float32)
            tx_ref[k - 1, rows, :] = t.astype(tx_ref.dtype)

        # K is a small static int: unroll the step dispatch; exactly one branch
        # executes per grid point (static scratch-slot indices everywhere).
        for step in range(K - 1):
            pl.when(kk == step)(functools.partial(recurrence, step))

    # Epilogue: on the last pass this row tile's Tx_0..Tx_{K-1} are all
    # available; K bf16 matmuls accumulated in f32, then bias, then one
    # lane-dense store.
    @pl.when(kk == n_steps - 1)
    def _():
        acc = jnp.dot(x_ref[rows, :], w_ref[0],
                      preferred_element_type=jnp.float32)
        for k in range(1, K):
            acc = acc + jnp.dot(tx_ref[k - 1, rows, :], w_ref[k],
                                preferred_element_type=jnp.float32)
        if use_bias:
            acc = acc + b_ref[...]
        out_ref[...] = acc.astype(out_ref.dtype)


def graph_conv_chebychev(x, L, weight, bias=None):
    """x: [N, F_in], L: [N, N], weight: [K, F_in, F_out], bias: [F_out] or None.
    Returns [N, F_out] float32."""
    N, F_in = x.shape
    K, _, F_out = weight.shape
    use_bias = bias is not None

    LANE = 128
    F_out_p = _round_up(F_out, LANE)        # lane-dense output stores

    vmem_cap = _vmem_capacity_bytes()
    budget = int(0.70 * vmem_cap)           # headroom for compiler temporaries

    def footprint(tm, n_pad):
        lane = lambda f: _round_up(f, LANE)
        fp = 2 * n_pad * lane(F_in) * 2                     # x (bf16, 2 bufs)
        fp += 2 * K * _round_up(F_in, 16) * F_out_p * 2     # W (bf16, 2 bufs)
        if use_bias:
            fp += 2 * 8 * F_out_p * 4                       # bias
        fp += 2 * tm * F_out_p * 4                          # out tile (f32, 2 bufs)
        if K > 1:
            fp += (K - 1) * n_pad * lane(F_in) * 2          # Tx scratch (bf16)
            fp += 2 * tm * n_pad * 2                        # L block (bf16, 2 bufs)
        return fp

    # ---- row tiling / residency decision --------------------------------
    N_min = _round_up(max(N, 16), 16)
    if K > 1 and footprint(N_min, N_min) <= budget:
        # L fully VMEM-resident: one row tile, L DMA'd from HBM exactly once.
        TM, N_pad = N_min, N_min
    else:
        # Stream L in large row slabs; allow <= ~10% padded rows to keep the
        # slab big even when N has an awkward factorization.
        TM = 16
        for cand in (1024, 512, 256, 128, 64, 32):
            n_pad_c = _round_up(N, cand)
            if (cand <= N_min and n_pad_c * 10 <= N_min * 11
                    and footprint(cand, n_pad_c) <= budget):
                TM = cand
                break
        N_pad = _round_up(max(N, TM), TM)
        while TM > 16 and footprint(TM, N_pad) > budget:
            TM //= 2
            N_pad = _round_up(max(N, TM), TM)

    n_tiles = N_pad // TM
    n_steps = max(K - 1, 1)
    last = n_steps - 1

    # ---- operand preparation ---------------------------------------------
    pad_rows = N_pad - N
    x_p = jnp.pad(x.astype(jnp.bfloat16), ((0, pad_rows), (0, 0)))
    w_p = jnp.pad(weight.astype(jnp.bfloat16),
                  ((0, 0), (0, 0), (0, F_out_p - F_out)))

    inputs = [x_p]
    in_specs = [pl.BlockSpec((N_pad, F_in), lambda kk, i: (0, 0))]   # x resident
    if K > 1:
        # Zero padding keeps padded rows of every Tx exactly zero.
        L_p = jnp.pad(L.astype(jnp.bfloat16), ((0, pad_rows), (0, pad_rows)))
        inputs.append(L_p)
        # When TM == N_pad the block index is constant -> L stays resident.
        in_specs.append(pl.BlockSpec((TM, N_pad), lambda kk, i: (i, 0)))
    inputs.append(w_p)
    in_specs.append(pl.BlockSpec((K, F_in, F_out_p), lambda kk, i: (0, 0, 0)))
    if use_bias:
        b_p = jnp.pad(bias.astype(jnp.float32).reshape(1, F_out),
                      ((0, 0), (0, F_out_p - F_out)))
        inputs.append(b_p)
        in_specs.append(pl.BlockSpec((1, F_out_p), lambda kk, i: (0, 0)))

    # Output block index is pinned to 0 on non-final passes so uninitialized
    # tiles are never written back; only the last pass produces writebacks.
    out_spec = pl.BlockSpec(
        (TM, F_out_p), lambda kk, i: (jnp.where(kk == last, i, 0), 0))

    scratch = []
    if K > 1:
        scratch.append(pltpu.VMEM((K - 1, N_pad, F_in), jnp.bfloat16))

    kernel = functools.partial(_cheb_kernel, K=K, TM=TM, use_bias=use_bias)

    flops = 2 * (K - 1) * N_pad * N_pad * F_in + 2 * K * N_pad * F_in * F_out_p
    l_streams = 0 if K == 1 else (1 if TM == N_pad else (K - 1))
    bytes_accessed = (l_streams * N_pad * N_pad * 2       # L traffic
                      + N_pad * F_in * 2                  # x
                      + K * F_in * F_out_p * 2            # weights
                      + N_pad * F_out_p * 4               # output (written once)
                      + (F_out_p * 4 if use_bias else 0))

    fp = footprint(TM, N_pad)
    vmem_limit = int(min(max(fp + (12 << 20), 32 << 20), int(0.9 * vmem_cap)))
    compiler_params = pltpu.CompilerParams(
        # Both axes sequential: Tx_k needs every row of Tx_{k-1} and the Tx
        # scratch is shared across row tiles -> never mark these "parallel".
        dimension_semantics=("arbitrary", "arbitrary"),
        vmem_limit_bytes=vmem_limit,
    )

    out_p = pl.pallas_call(
        kernel,
        out_shape=jax.ShapeDtypeStruct((N_pad, F_out_p), jnp.float32),
        grid=(n_steps, n_tiles),
        in_specs=in_specs,
        out_specs=out_spec,
        scratch_shapes=scratch,
        compiler_params=compiler_params,
        cost_estimate=pl.CostEstimate(flops=int(flops), transcendentals=0,
                                      bytes_accessed=int(bytes_accessed)),
    )(*inputs)

    return out_p[:N, :F_out]


def _reference(x, L, weight, bias):
    """Pure-JAX f32 reference mirroring the PyTorch forward."""
    K = weight.shape[0]
    tx0 = x
    out = tx0 @ weight[0]
    if K > 1:
        tx1 = L @ x
        out = out + tx1 @ weight[1]
        for k in range(2, K):
            tx2 = 2.0 * (L @ tx1) - tx0
            out = out + tx2 @ weight[k]
            tx0, tx1 = tx1, tx2
    if bias is not None:
        out = out + bias
    return out


if __name__ == "__main__":
    # Small, deterministic problem: N nodes, F_in -> F_out, Chebyshev order K.
    N, F_in, F_out, K = 128, 32, 32, 3

    key = jax.random.PRNGKey(0)
    kx, kl, kw, kb = jax.random.split(key, 4)

    x = jax.random.normal(kx, (N, F_in), dtype=jnp.float32)
    # Symmetric "Laplacian-like" matrix (contents arbitrary for the kernel).
    A = jax.random.normal(kl, (N, N), dtype=jnp.float32) / math.sqrt(N)
    L = 0.5 * (A + A.T)

    # Weight init mirrors reset_parameters(): U(-stdv, stdv), stdv = 1/sqrt(F_in).
    stdv = 1.0 / math.sqrt(F_in)
    weight = jax.random.uniform(
        kw, (K, F_in, F_out), dtype=jnp.float32, minval=-stdv, maxval=stdv)
    # Non-zero bias to exercise the bias path (module default init is 0).
    bias = 0.1 * jax.random.normal(kb, (F_out,), dtype=jnp.float32)

    out = graph_conv_chebychev(x, L, weight, bias)
    out = jax.block_until_ready(out)

    ref = _reference(x, L, weight, bias)
    assert out.shape == (N, F_out)
    err = jnp.max(jnp.abs(out - ref))
    # L, x, the Chebyshev state and the weights are all bf16 on the MXU with
    # f32 accumulation, so compare with a bf16-level tolerance.
    assert jnp.allclose(out, ref, atol=1e-1, rtol=1e-1), f"max abs err = {err}"

    print("KERNEL_OK")
</pallas_src>

<mosaic_0001>
module attributes {stable_mosaic.version = 11 : i64} {
  func.func @_cheb_kernel(%arg0: i32, %arg1: i32, %arg2: memref<128x32xbf16, #tpu.memory_space<vmem>>, %arg3: memref<128x128xbf16, #tpu.memory_space<vmem>>, %arg4: memref<3x32x128xbf16, #tpu.memory_space<vmem>>, %arg5: memref<1x128xf32, #tpu.memory_space<vmem>>, %arg6: memref<128x128xf32, #tpu.memory_space<vmem>>, %arg7: memref<2x128x32xbf16, #tpu.memory_space<vmem>>) attributes {dimension_semantics = [#tpu.dimension_semantics<arbitrary>, #tpu.dimension_semantics<arbitrary>], iteration_bounds = array<i64: 2, 1>, scalar_prefetch = 0 : i64, scratch_operands = 1 : i64, tpu.core_type = #tpu.core_type<tc>, window_params = [{pipeline_mode = #tpu.pipeline_mode<synchronous>, transform_indices = @transform_0, window_bounds = array<i64: 128, 32>}, {transform_indices = @transform_1, window_bounds = array<i64: 128, 128>}, {pipeline_mode = #tpu.pipeline_mode<synchronous>, transform_indices = @transform_2, window_bounds = array<i64: 3, 32, 128>}, {pipeline_mode = #tpu.pipeline_mode<synchronous>, transform_indices = @transform_3, window_bounds = array<i64: 1, 128>}, {transform_indices = @transform_4, window_bounds = array<i64: 128, 128>}]} {
    %c128_i32 = arith.constant 128 : i32
    %0 = arith.muli %arg1, %c128_i32 : i32
    %1 = tpu.assume_multiple %0, 128 : i32
    %c0_i32 = arith.constant 0 : i32
    %2 = arith.cmpi eq, %arg0, %c0_i32 : i32
    %3 = arith.extui %2 : i1 to i32
    %c0_i32_0 = arith.constant 0 : i32
    %4 = arith.cmpi ne, %3, %c0_i32_0 : i32
    scf.if %4 {
      %c0 = arith.constant 0 : index
      %c0_4 = arith.constant 0 : index
      %11 = vector.load %arg2[%c0, %c0_4] : memref<128x32xbf16, #tpu.memory_space<vmem>>, vector<128x32xbf16>
      %c0_5 = arith.constant 0 : index
      %c0_6 = arith.constant 0 : index
      %12 = vector.load %arg3[%c0_5, %c0_6] : memref<128x128xbf16, #tpu.memory_space<vmem>>, vector<128x128xbf16>
      %cst = arith.constant dense<0.000000e+00> : vector<128x32xf32>
      %13 = tpu.matmul %12, %11, %cst {dimension_numbers = #tpu.dot_dimension_numbers<[1], [0], [0], [1], [0, 0, 1, 1], [], []>} : vector<128x128xbf16>, vector<128x32xbf16>, vector<128x32xf32> -> vector<128x32xf32>
      %14 = arith.truncf %13 : vector<128x32xf32> to vector<128x32xbf16>
      %c0_7 = arith.constant 0 : index
      %15 = arith.index_cast %1 : i32 to index
      %c0_8 = arith.constant 0 : index
      %16 = vector.load %arg7[%c0_7, %15, %c0_8] : memref<2x128x32xbf16, #tpu.memory_space<vmem>>, vector<1x128x32xbf16>
      %17 = vector.shape_cast %16 : vector<1x128x32xbf16> to vector<128x32xbf16>
      %18 = vector.shape_cast %14 : vector<128x32xbf16> to vector<1x128x32xbf16>
      tpu.vector_store %arg7[%c0_7, %15, %c0_8], %18 {strides = array<i32>} : memref<2x128x32xbf16, #tpu.memory_space<vmem>>, vector<1x128x32xbf16>,
    } else {
    }
    %c1_i32 = arith.constant 1 : i32
    %5 = arith.cmpi eq, %arg0, %c1_i32 : i32
    %6 = arith.extui %5 : i1 to i32
    %c0_i32_1 = arith.constant 0 : i32
    %7 = arith.cmpi ne, %6, %c0_i32_1 : i32
    scf.if %7 {
      %c0 = arith.constant 0 : index
      %c0_4 = arith.constant 0 : index
      %c0_5 = arith.constant 0 : index
      %11 = vector.load %arg7[%c0, %c0_4, %c0_5] : memref<2x128x32xbf16, #tpu.memory_space<vmem>>, vector<1x128x32xbf16>
      %12 = vector.shape_cast %11 : vector<1x128x32xbf16> to vector<128x32xbf16>
      %c0_6 = arith.constant 0 : index
      %c0_7 = arith.constant 0 : index
      %13 = vector.load %arg3[%c0_6, %c0_7] : memref<128x128xbf16, #tpu.memory_space<vmem>>, vector<128x128xbf16>
      %cst = arith.constant dense<0.000000e+00> : vector<128x32xf32>
      %14 = tpu.matmul %13, %12, %cst {dimension_numbers = #tpu.dot_dimension_numbers<[1], [0], [0], [1], [0, 0, 1, 1], [], []>} : vector<128x128xbf16>, vector<128x32xbf16>, vector<128x32xf32> -> vector<128x32xf32>
      %15 = arith.index_cast %1 : i32 to index
      %c0_8 = arith.constant 0 : index
      %16 = vector.load %arg2[%15, %c0_8] : memref<128x32xbf16, #tpu.memory_space<vmem>>, vector<128x32xbf16>
      %cst_9 = arith.constant 2.000000e+00 : f32
      %17 = vector.broadcast %cst_9 : f32 to vector<128x32xf32>
      %18 = arith.mulf %17, %14 : vector<128x32xf32>
      %19 = arith.extf %16 : vector<128x32xbf16> to vector<128x32xf32>
      %20 = arith.subf %18, %19 : vector<128x32xf32>
      %21 = arith.truncf %20 : vector<128x32xf32> to vector<128x32xbf16>
      %c1 = arith.constant 1 : index
      %22 = arith.index_cast %1 : i32 to index
      %c0_10 = arith.constant 0 : index
      %23 = vector.load %arg7[%c1, %22, %c0_10] : memref<2x128x32xbf16, #tpu.memory_space<vmem>>, vector<1x128x32xbf16>
      %24 = vector.shape_cast %23 : vector<1x128x32xbf16> to vector<128x32xbf16>
      %25 = vector.shape_cast %21 : vector<128x32xbf16> to vector<1x128x32xbf16>
      tpu.vector_store %arg7[%c1, %22, %c0_10], %25 {strides = array<i32>} : memref<2x128x32xbf16, #tpu.memory_space<vmem>>, vector<1x128x32xbf16>,
    } else {
    }
    %c1_i32_2 = arith.constant 1 : i32
    %8 = arith.cmpi eq, %arg0, %c1_i32_2 : i32
    %9 = arith.extui %8 : i1 to i32
    %c0_i32_3 = arith.constant 0 : i32
    %10 = arith.cmpi ne, %9, %c0_i32_3 : i32
    scf.if %10 {
      %11 = arith.index_cast %1 : i32 to index
      %c0 = arith.constant 0 : index
      %12 = vector.load %arg2[%11, %c0] : memref<128x32xbf16, #tpu.memory_space<vmem>>, vector<128x32xbf16>
      %c0_4 = arith.constant 0 : index
      %c0_5 = arith.constant 0 : index
      %c0_6 = arith.constant 0 : index
      %13 = vector.load %arg4[%c0_4, %c0_5, %c0_6] : memref<3x32x128xbf16, #tpu.memory_space<vmem>>, vector<1x32x128xbf16>
      %14 = vector.shape_cast %13 : vector<1x32x128xbf16> to vector<32x128xbf16>
      %cst = arith.constant dense<0.000000e+00> : vector<128x128xf32>
      %15 = tpu.matmul %12, %14, %cst {dimension_numbers = #tpu.dot_dimension_numbers<[1], [0], [0], [1], [0, 0, 1, 1], [], []>} : vector<128x32xbf16>, vector<32x128xbf16>, vector<128x128xf32> -> vector<128x128xf32>
      %c0_7 = arith.constant 0 : index
      %16 = arith.index_cast %1 : i32 to index
      %c0_8 = arith.constant 0 : index
      %17 = vector.load %arg7[%c0_7, %16, %c0_8] : memref<2x128x32xbf16, #tpu.memory_space<vmem>>, vector<1x128x32xbf16>
      %18 = vector.shape_cast %17 : vector<1x128x32xbf16> to vector<128x32xbf16>
      %c1 = arith.constant 1 : index
      %c0_9 = arith.constant 0 : index
      %c0_10 = arith.constant 0 : index
      %19 = vector.load %arg4[%c1, %c0_9, %c0_10] : memref<3x32x128xbf16, #tpu.memory_space<vmem>>, vector<1x32x128xbf16>
      %20 = vector.shape_cast %19 : vector<1x32x128xbf16> to vector<32x128xbf16>
      %cst_11 = arith.constant dense<0.000000e+00> : vector<128x128xf32>
      %21 = tpu.matmul %18, %20, %cst_11 {dimension_numbers = #tpu.dot_dimension_numbers<[1], [0], [0], [1], [0, 0, 1, 1], [], []>} : vector<128x32xbf16>, vector<32x128xbf16>, vector<128x128xf32> -> vector<128x128xf32>
      %22 = arith.addf %15, %21 : vector<128x128xf32>
      %c1_12 = arith.constant 1 : index
      %23 = arith.index_cast %1 : i32 to index
      %c0_13 = arith.constant 0 : index
      %24 = vector.load %arg7[%c1_12, %23, %c0_13] : memref<2x128x32xbf16, #tpu.memory_space<vmem>>, vector<1x128x32xbf16>
      %25 = vector.shape_cast %24 : vector<1x128x32xbf16> to vector<128x32xbf16>
      %c2 = arith.constant 2 : index
      %c0_14 = arith.constant 0 : index
      %c0_15 = arith.constant 0 : index
      %26 = vector.load %arg4[%c2, %c0_14, %c0_15] : memref<3x32x128xbf16, #tpu.memory_space<vmem>>, vector<1x32x128xbf16>
      %27 = vector.shape_cast %26 : vector<1x32x128xbf16> to vector<32x128xbf16>
      %cst_16 = arith.constant dense<0.000000e+00> : vector<128x128xf32>
      %28 = tpu.matmul %25, %27, %cst_16 {dimension_numbers = #tpu.dot_dimension_numbers<[1], [0], [0], [1], [0, 0, 1, 1], [], []>} : vector<128x32xbf16>, vector<32x128xbf16>, vector<128x128xf32> -> vector<128x128xf32>
      %29 = arith.addf %22, %28 : vector<128x128xf32>
      %c0_17 = arith.constant 0 : index
      %c0_18 = arith.constant 0 : index
      %30 = vector.load %arg5[%c0_17, %c0_18] : memref<1x128xf32, #tpu.memory_space<vmem>>, vector<1x128xf32>
      %31 = vector.broadcast %30 : vector<1x128xf32> to vector<128x128xf32>
      %32 = arith.addf %29, %31 : vector<128x128xf32>
      %c0_19 = arith.constant 0 : index
      %c0_20 = arith.constant 0 : index
      %33 = vector.load %arg6[%c0_19, %c0_20] : memref<128x128xf32, #tpu.memory_space<vmem>>, vector<128x128xf32>
      tpu.vector_store %arg6[%c0_19, %c0_20], %32 {strides = array<i32>} : memref<128x128xf32, #tpu.memory_space<vmem>>, vector<128x128xf32>,
    } else {
    }
    return
  }
  func.func @transform_0(%arg0: i32, %arg1: i32) -> (i32, i32) {
    %c0_i32 = arith.constant 0 : i32
    %c0_i32_0 = arith.constant 0 : i32
    %c0_i32_1 = arith.constant 0 : i32
    return %c0_i32, %c0_i32_0 : i32, i32
  }
  func.func @transform_1(%arg0: i32, %arg1: i32) -> (i32, i32) {
    %c0_i32 = arith.constant 0 : i32
    %c0_i32_0 = arith.constant 0 : i32
    return %arg1, %c0_i32 : i32, i32
  }
  func.func @transform_2(%arg0: i32, %arg1: i32) -> (i32, i32, i32) {
    %c0_i32 = arith.constant 0 : i32
    %c0_i32_0 = arith.constant 0 : i32
    %c0_i32_1 = arith.constant 0 : i32
    %c0_i32_2 = arith.constant 0 : i32
    return %c0_i32, %c0_i32_0, %c0_i32_1 : i32, i32, i32
  }
  func.func @transform_3(%arg0: i32, %arg1: i32) -> (i32, i32) {
    %c0_i32 = arith.constant 0 : i32
    %c0_i32_0 = arith.constant 0 : i32
    %c0_i32_1 = arith.constant 0 : i32
    return %c0_i32, %c0_i32_0 : i32, i32
  }
  func.func @transform_4(%arg0: i32, %arg1: i32) -> (i32, i32) {
    %c1_i32 = arith.constant 1 : i32
    %0 = arith.cmpi eq, %arg0, %c1_i32 : i32
    %c0_i32 = arith.constant 0 : i32
    %1 = arith.select %0, %arg1, %c0_i32 : i32
    %c0_i32_0 = arith.constant 0 : i32
    %c0_i32_1 = arith.constant 0 : i32
    return %1, %c0_i32_0 : i32, i32
  }
}

</mosaic_0001>

<bundles_post_ra>
// kernel: tpu_custom_call.1
= control target key start
LH: loop header
LB: loop body
LE: loop exit
PB: predicated region body
PF: predicated region fallthrough
CT: control target
= control target key end

     0   :  { %9 = vsyncpa [#allocation4], 0  ;;  %s2211_s0 = inlined_call_operand.vmem [shape: bf16[128,32], index: 0, kind: input, shape index: {}]   ;;  %s2212_s1 = inlined_call_operand.vmem [shape: bf16[128,128], index: 1, kind: input, shape index: {}]   ;;  %s2213_s2 = inlined_call_operand.hbm [shape: bf16[3,32,128], index: 2, kind: input, shape index: {}]   ;;  %s2214_s3 = inlined_call_operand.vmem [shape: f32[1,128], index: 3, kind: input, shape index: {}]   ;;  %s2215_s4 = inlined_call_operand.hbm [shape: f32[128,128], index: 4, kind: output, shape index: {}]  }
   0x1   :  { %10 = vsyncpa [#allocation5], 0 }
   0x2   :  { %12 = vsyncpa [#allocation5 + $0x1], 0  ;;  %s1958_s15 = smov 0   ;;  %s1960_s16 = smov 0  }
   0x3   :  { %s1962_s17 = smov 0  }
   0x4 LB: > { %s1343_s18 = sadd.s32 4294967295, %s1925_s17   ;;  %s1344_s19 = sadd.s32 4294967294, %s1925_s17   ;;  %s1925_s17 = sphi %s1962_s17, %s18_s17   ;;  %s1921_s16 = sphi %s1960_s16, %s2218_s16   ;;  %s1917_s15 = sphi %s1958_s15, %s2217_s15  }
   0x5   : > { %s30_s20 = sadd.s32 1, %s1921_s16  ;;  %p1345_p0 = scmp.ge.s32.totalorder %s1925_s17, 1 }
   0x6   : > { %p32_p1 = scmp.ge.s32.totalorder %s30_s20, 2  ;;  %p154_p2 = scmp.lt.s32.totalorder %s1925_s17, 3 }
   0x7   : > { %p1980_p3 = scmp.eq.s32.totalorder %s1343_s18, 0  ;;  %s177_s24 = sshll.u32 %s2213_s2, 4  ;;  %s178_s24 = int_to_ptr.hbm [resolvable:$true] %s177_s24 }
   0x8   : > { %s2220_s20 = smov (%p32_p1, %s30_s20), 0  ;;  %p155_p4 = pnand %p1345_p0, %p154_p2 }
   0x9   : > { %s1927_s25 = smov [#allocation3]   ;;  %s1928_s27 = smov 64  }
   0xa   : > { %p1793_p5 = pneg %p155_p4  ;;  %s179_s26 = sshll.u32 %s1927_s25, 4  ;;  %s180_s26 = int_to_ptr.vmem [resolvable:$true] %s179_s26 }
   0xb   : > { %s1929_s28 = smov 4   ;;  %198 = sbr.rel (%p155_p4) target bundleno = 665 (0x299), region = 36 }
   0xc   : > { %p1794_p6 = pnand %p1980_p3, %p1793_p5 }
   0xe   : > { %1796 = dma.hbm_to_vmem [thread:$0]  (!%p1794_p6), %s178_s24, 768, %s180_s26, [#allocation4], %s1928_s27, %s1928_s27, %s1929_s28  }
  0x10   : > { %1908 = dma.done.wait (%p1980_p3), [#allocation4], 768  }
  0x11   : > { %1910 = vsyncadd (%p1980_p3), [#allocation4], 4294966528  ;;  %p1350_p7 = scmp.ne.s32.totalorder %s1917_s15, 0 }
  0x13   : > { %239 = sbr.rel (%p1350_p7) target bundleno = 217 (0xd9), region = 44 }
  0x18   : > { %v1667_v0 = vld [vmem:[%s2211_s0 + $0x38] sm:$0xff]  ;;  %v1666_v1 = vld [vmem:[%s2211_s0 + $0x30] sm:$0xff]  ;;  %v1665_v2 = vld [vmem:[%s2211_s0 + $0x28] sm:$0xff]  ;;  %vm437_vm0 = vcmask 257024  }
  0x19   : > { %368 = vmatpush.bf16.msra.mxu0 %v1667_v0  ;;  %1761 = vmatpush.bf16.msra.mxu1 %v1667_v0  ;;  %v1664_v3 = vld [vmem:[%s2211_s0 + $0x20] sm:$0xff]  ;;  %v1663_v4 = vld [vmem:[%s2211_s0 + $0x18] sm:$0xff]  ;;  %v1662_v5 = vld [vmem:[%s2211_s0 + $0x10] sm:$0xff] }
  0x1a   : > { %1762 = vmatpush.bf16.msra.mxu2 %v1667_v0  ;;  %1763 = vmatpush.bf16.msra.mxu3 %v1667_v0  ;;  %v1661_v6 = vld [vmem:[%s2211_s0 + $0x8] sm:$0xff]  ;;  %v1660_v7 = vld [vmem:[%s2211_s0] sm:$0xff]  ;;  %v1670_v9 = vld [vmem:[%s2212_s1 + $0x10] sm:$0xff] }
  0x1b   : > { %v1668_v8 = vld [vmem:[%s2212_s1] sm:$0xff]  ;;  %v1674_v11 = vld [vmem:[%s2212_s1 + $0x30] sm:$0xff]  ;;  %v1669_v12 = vld [vmem:[%s2212_s1 + $0x8] sm:$0xff] }
  0x1c   : > { %v1672_v10 = vld [vmem:[%s2212_s1 + $0x20] sm:$0xff]  ;;  %v1671_v13 = vld [vmem:[%s2212_s1 + $0x18] sm:$0xff]  ;;  %v1673_v14 = vld [vmem:[%s2212_s1 + $0x28] sm:$0xff] }
  0x1d   : > { %369 = vmatpush.bf16.msra.mxu0 %v1666_v1  ;;  %1764 = vmatpush.bf16.msra.mxu1 %v1666_v1  ;;  %v1675_v15 = vld [vmem:[%s2212_s1 + $0x38] sm:$0xff] }
  0x1e   : > { %1765 = vmatpush.bf16.msra.mxu2 %v1666_v1  ;;  %1766 = vmatpush.bf16.msra.mxu3 %v1666_v1 }
  0x21   : > { %370 = vmatpush.bf16.msra.mxu0 %v1665_v2  ;;  %1767 = vmatpush.bf16.msra.mxu1 %v1665_v2 }
  0x22   : > { %1768 = vmatpush.bf16.msra.mxu2 %v1665_v2  ;;  %1769 = vmatpush.bf16.msra.mxu3 %v1665_v2 }
  0x25   : > { %371 = vmatpush.bf16.msra.mxu0 %v1664_v3  ;;  %1770 = vmatpush.bf16.msra.mxu1 %v1664_v3 }
  0x26   : > { %1771 = vmatpush.bf16.msra.mxu2 %v1664_v3  ;;  %1772 = vmatpush.bf16.msra.mxu3 %v1664_v3 }
  0x29   : > { %372 = vmatpush.bf16.msra.mxu0 %v1663_v4  ;;  %1773 = vmatpush.bf16.msra.mxu1 %v1663_v4 }
  0x2a   : > { %1774 = vmatpush.bf16.msra.mxu2 %v1663_v4  ;;  %1775 = vmatpush.bf16.msra.mxu3 %v1663_v4 }
  0x2d   : > { %373 = vmatpush.bf16.msra.mxu0 %v1662_v5  ;;  %1776 = vmatpush.bf16.msra.mxu1 %v1662_v5 }
  0x2e   : > { %1777 = vmatpush.bf16.msra.mxu2 %v1662_v5  ;;  %1778 = vmatpush.bf16.msra.mxu3 %v1662_v5 }
  0x31   : > { %374 = vmatpush.bf16.msra.mxu0 %v1661_v6  ;;  %1779 = vmatpush.bf16.msra.mxu1 %v1661_v6 }
  0x32   : > { %1780 = vmatpush.bf16.msra.mxu2 %v1661_v6  ;;  %1781 = vmatpush.bf16.msra.mxu3 %v1661_v6 }
  0x35   : > { %375 = vmatpush.bf16.msra.mxu0 %v1660_v7  ;;  %1782 = vmatpush.bf16.msra.mxu1 %v1660_v7 }
  0x36   : > { %1783 = vmatpush.bf16.msra.mxu2 %v1660_v7  ;;  %1784 = vmatpush.bf16.msra.mxu3 %v1660_v7 }
  0x38   : > { %376 = vmatmul.bf16.vlgmr.msra.gmra.mxu0 %v1668_v8  ;;  %386 = vmatmul.bf16.vlgmr.msra.gmra.mxu1 %v1670_v9 }
  0x39   : > { %396 = vmatmul.bf16.vlgmr.msra.gmra.mxu2 %v1672_v10  ;;  %406 = vmatmul.bf16.vlgmr.msra.gmra.mxu3 %v1674_v11 }
  0x48   : > { %381 = vmatmul.bf16.gmra.mxu0 %v1669_v12  ;;  %391 = vmatmul.bf16.gmra.mxu1 %v1671_v13 }
  0x49   : > { %401 = vmatmul.bf16.gmra.mxu2 %v1673_v14  ;;  %411 = vmatmul.bf16.gmra.mxu3 %v1675_v15 }
  0xb5   : > { %v377_v16 = vpop.f32.mrf.mxu0  ;;  %v387_v17 = vpop.f32.mrf.mxu1 }
  0xb6   : > { %v417_v18 = vpack.c.bf16 %v377_v16, %v377_v16  ;;  %v421_v19 = vpack.c.bf16 %v387_v17, %v387_v17 }
  0xb8   : > { %438 = vst.msk [vmem:[#allocation2] sm:$0xf] %vm437_vm0, %v417_v18 }
  0xb9   : > { %442 = vst.msk [vmem:[#allocation2 + $0x10] sm:$0xf] %vm437_vm0, %v421_v19 }
  0xbc   : > { %v397_v20 = vpop.f32.mrf.mxu2  ;;  %v407_v21 = vpop.f32.mrf.mxu3 }
  0xbd   : > { %v425_v22 = vpack.c.bf16 %v397_v20, %v397_v20  ;;  %v429_v23 = vpack.c.bf16 %v407_v21, %v407_v21  ;;  %v379_v24 = vpop.f32.mrf.mxu0  ;;  %v389_v25 = vpop.f32.mrf.mxu1 }
  0xbe   : > { %v418_v26 = vpack.c.bf16 %v379_v24, %v379_v24  ;;  %v422_v27 = vpack.c.bf16 %v389_v25, %v389_v25 }
  0xbf   : > { %446 = vst.msk [vmem:[#allocation2 + $0x20] sm:$0xf] %vm437_vm0, %v425_v22 }
  0xc0   : > { %450 = vst.msk [vmem:[#allocation2 + $0x30] sm:$0xf] %vm437_vm0, %v429_v23 }
  0xc1   : > { %439 = vst.msk [vmem:[#allocation2 + $0x4] sm:$0xf] %vm437_vm0, %v418_v26 }
  0xc2   : > { %443 = vst.msk [vmem:[#allocation2 + $0x14] sm:$0xf] %vm437_vm0, %v422_v27 }
  0xc4   : > { %v399_v28 = vpop.f32.mrf.mxu2  ;;  %v409_v29 = vpop.f32.mrf.mxu3 }
  0xc5   : > { %v426_v30 = vpack.c.bf16 %v399_v28, %v399_v28  ;;  %v430_v31 = vpack.c.bf16 %v409_v29, %v409_v29  ;;  %v382_v32 = vpop.f32.mrf.mxu0  ;;  %v392_v33 = vpop.f32.mrf.mxu1 }
  0xc6   : > { %v419_v34 = vpack.c.bf16 %v382_v32, %v382_v32  ;;  %v423_v35 = vpack.c.bf16 %v392_v33, %v392_v33 }
  0xc7   : > { %447 = vst.msk [vmem:[#allocation2 + $0x24] sm:$0xf] %vm437_vm0, %v426_v30 }
  0xc8   : > { %451 = vst.msk [vmem:[#allocation2 + $0x34] sm:$0xf] %vm437_vm0, %v430_v31 }
  0xc9   : > { %440 = vst.msk [vmem:[#allocation2 + $0x8] sm:$0xf] %vm437_vm0, %v419_v34 }
  0xca   : > { %444 = vst.msk [vmem:[#allocation2 + $0x18] sm:$0xf] %vm437_vm0, %v423_v35 }
  0xcc   : > { %v402_v36 = vpop.f32.mrf.mxu2  ;;  %v412_v37 = vpop.f32.mrf.mxu3 }
  0xcd   : > { %v427_v38 = vpack.c.bf16 %v402_v36, %v402_v36  ;;  %v431_v39 = vpack.c.bf16 %v412_v37, %v412_v37  ;;  %v384_v40 = vpop.f32.mrf.mxu0  ;;  %v394_v41 = vpop.f32.mrf.mxu1 }
  0xce   : > { %v420_v42 = vpack.c.bf16 %v384_v40, %v384_v40  ;;  %v424_v43 = vpack.c.bf16 %v394_v41, %v394_v41 }
  0xcf   : > { %448 = vst.msk [vmem:[#allocation2 + $0x28] sm:$0xf] %vm437_vm0, %v427_v38 }
  0xd0   : > { %452 = vst.msk [vmem:[#allocation2 + $0x38] sm:$0xf] %vm437_vm0, %v431_v39 }
  0xd1   : > { %441 = vst.msk [vmem:[#allocation2 + $0xc] sm:$0xf] %vm437_vm0, %v420_v42 }
  0xd2   : > { %445 = vst.msk [vmem:[#allocation2 + $0x1c] sm:$0xf] %vm437_vm0, %v424_v43 }
  0xd4   : > { %v404_v44 = vpop.f32.mrf.mxu2  ;;  %v414_v45 = vpop.f32.mrf.mxu3 }
  0xd5   : > { %v428_v46 = vpack.c.bf16 %v404_v44, %v404_v44  ;;  %v432_v47 = vpack.c.bf16 %v414_v45, %v414_v45 }
  0xd7   : > { %449 = vst.msk [vmem:[#allocation2 + $0x2c] sm:$0xf] %vm437_vm0, %v428_v46 }
  0xd8   : > { %453 = vst.msk [vmem:[#allocation2 + $0x3c] sm:$0xf] %vm437_vm0, %v432_v47 }
  0xd9 PF: > { %p1415_p8 = scmp.ne.s32.totalorder %s1917_s15, 1 }
  0xdb   : > { %457 = sbr.rel (%p1415_p8) target bundleno = 661 (0x295), region = 48 }
  0xe0   : > { %v1683_v48 = vld [vmem:[#allocation2 + $0x38] sm:$0xff]  ;;  %v1682_v49 = vld [vmem:[#allocation2 + $0x30] sm:$0xff]  ;;  %v1681_v50 = vld [vmem:[#allocation2 + $0x28] sm:$0xff]  ;;  %vm834_vm1 = vcmask 261120   ;;  %vm722_vm2 = vcmask 257024  }
  0xe1   : > { %586 = vmatpush.bf16.msra.mxu0 %v1683_v48  ;;  %v1680_v51 = vld [vmem:[#allocation2 + $0x20] sm:$0xff]  ;;  %v1679_v52 = vld [vmem:[#allocation2 + $0x18] sm:$0xff]  ;;  %v1678_v53 = vld [vmem:[#allocation2 + $0x10] sm:$0xff] }
  0xe2   : > { %v1677_v54 = vld [vmem:[#allocation2 + $0x8] sm:$0xff]  ;;  %v1676_v55 = vld [vmem:[#allocation2] sm:$0xff]  ;;  %v1686_v58 = vld [vmem:[%s2212_s1 + $0x10] sm:$0xff] }
  0xe3   : > { %v1684_v56 = vld [vmem:[%s2212_s1] sm:$0xff]  ;;  %v1685_v57 = vld [vmem:[%s2212_s1 + $0x8] sm:$0xff]  ;;  %v1687_v59 = vld [vmem:[%s2212_s1 + $0x18] sm:$0xff] }
  0xe4   : > { %v1688_v60 = vld [vmem:[%s2212_s1 + $0x20] sm:$0xff]  ;;  %v1689_v61 = vld [vmem:[%s2212_s1 + $0x28] sm:$0xff]  ;;  %v1690_v62 = vld [vmem:[%s2212_s1 + $0x30] sm:$0xff] }
  0xe5   : > { %587 = vmatpush.bf16.msra.mxu0 %v1682_v49  ;;  %v1701_v63 = vld [vmem:[#allocation3 + $0x8] sm:$0xff]  ;;  %v1700_v0 = vld [vmem:[#allocation3] sm:$0xff]  ;;  %v1711_v1 = vld [vmem:[#allocation3 + $0x18] sm:$0xff] }
  0xe6   : > { %990 = vmatpush.bf16.msra.mxu2 %v1701_v63  ;;  %v1692_v2 = vld [vmem:[%s2211_s0] sm:$0xff]  ;;  %865 = vmatpush.bf16.msra.mxu1 %v1711_v1  ;;  %v1691_v3 = vld [vmem:[%s2212_s1 + $0x38] sm:$0xff]  ;;  %v1710_v4 = vld [vmem:[#allocation3 + $0x10] sm:$0xff] }
  0xe7   : > { %v1721_v5 = vld [vmem:[#allocation3 + $0x28] sm:$0xff]  ;;  %v1702_v6 = vld [vmem:[#allocation2] sm:$0xff]  ;;  %v1694_v21 = vld [vmem:[%s2211_s0 + $0x10] sm:$0xff] }
  0xe8   : > { %1136 = vmatpush.bf16.msra.mxu3 %v1721_v5  ;;  %v1720_v7 = vld [vmem:[#allocation3 + $0x20] sm:$0xff]  ;;  %v1693_v9 = vld [vmem:[%s2211_s0 + $0x8] sm:$0xff]  ;;  %v1704_v26 = vld [vmem:[#allocation2 + $0x10] sm:$0xff] }
  0xe9   : > { %588 = vmatpush.bf16.msra.mxu0 %v1681_v50  ;;  %v1723_v8 = vld [vmem:[%s2211_s0] sm:$0xff]   ;;  %v1703_v13 = vld [vmem:[#allocation2 + $0x8] sm:$0xff]  ;;  %v1755_v34 = vld [vmem:[%s2211_s0 + $0x10] sm:$0xff]  }
  0xea   : > { %991 = vmatpush.bf16.msra.mxu2 %v1700_v0  ;;  %866 = vmatpush.bf16.msra.mxu1 %v1710_v4  ;;  %v1724_v10 = vunpack.c.l.bf16 %v1723_v8  ;;  %v1725_v16 = vunpack.c.h.bf16 %v1723_v8  ;;  %v1754_v20 = vld [vmem:[%s2211_s0 + $0x8] sm:$0xff]   ;;  %v1695_v35 = vld [vmem:[%s2211_s0 + $0x18] sm:$0xff]  ;;  %v1732_v37 = vunpack.c.l.bf16 %v1755_v34  ;;  %v1733_v44 = vunpack.c.h.bf16 %v1755_v34  ;;  %v1696_v49 = vld [vmem:[%s2211_s0 + $0x20] sm:$0xff] }
  0xeb   : > { %v1728_v23 = vunpack.c.l.bf16 %v1754_v20  ;;  %v1729_v30 = vunpack.c.h.bf16 %v1754_v20  ;;  %v1705_v40 = vld [vmem:[#allocation2 + $0x18] sm:$0xff]  ;;  %v1697_v63 = vld [vmem:[%s2211_s0 + $0x28] sm:$0xff] }
  0xec   : > { %1137 = vmatpush.bf16.msra.mxu3 %v1720_v7  ;;  %v1756_v48 = vld [vmem:[%s2211_s0 + $0x18] sm:$0xff]   ;;  %v1707_v4 = vld [vmem:[#allocation2 + $0x28] sm:$0xff] }
  0xed   : > { %589 = vmatpush.bf16.msra.mxu0 %v1680_v51  ;;  %1584 = vmatmul.msk.bf16.vlgmr.msra.gmra.mxu2 %vm834_vm1, %v1692_v2  ;;  %v1736_v51 = vunpack.c.l.bf16 %v1756_v48 }
  0xee   : > { %1536 = vmatmul.msk.bf16.vlgmr.msra.gmra.mxu1 %vm834_vm1, %v1702_v6 }
  0xf1   : > { %590 = vmatpush.bf16.msra.mxu0 %v1679_v52 }
  0xf5   : > { %591 = vmatpush.bf16.msra.mxu0 %v1678_v53 }
  0xf9   : > { %592 = vmatpush.bf16.msra.mxu0 %v1677_v54  ;;  %v1706_v54 = vld [vmem:[#allocation2 + $0x20] sm:$0xff] }
  0xfd   : > { %593 = vmatpush.bf16.msra.mxu0 %v1676_v55  ;;  %1585 = vmatmul.msk.bf16.gmra.mxu2 %vm834_vm1, %v1693_v9 }
  0xfe   : > { %1537 = vmatmul.msk.bf16.gmra.mxu1 %vm834_vm1, %v1703_v13  ;;  %v1698_v13 = vld [vmem:[%s2211_s0 + $0x30] sm:$0xff] }
 0x100   : > { %594 = vmatmul.bf16.vlgmr.msra.gmra.mxu0 %v1684_v56 }
 0x10d   : > { %1586 = vmatmul.msk.bf16.gmra.mxu2 %vm834_vm1, %v1694_v21 }
 0x10e   : > { %1538 = vmatmul.msk.bf16.gmra.mxu1 %vm834_vm1, %v1704_v26  ;;  %v1759_v26 = vld [vmem:[%s2211_s0 + $0x30] sm:$0xff]  }
 0x110   : > { %599 = vmatmul.bf16.gmra.mxu0 %v1685_v57 }
 0x11d   : > { %1587 = vmatmul.msk.bf16.gmra.mxu2 %vm834_vm1, %v1695_v35 }
 0x11e   : > { %1539 = vmatmul.msk.bf16.gmra.mxu1 %vm834_vm1, %v1705_v40  ;;  %v1760_v40 = vld [vmem:[%s2211_s0 + $0x38] sm:$0xff]  }
 0x120   : > { %604 = vmatmul.bf16.gmra.mxu0 %v1686_v58  ;;  %v1737_v58 = vunpack.c.h.bf16 %v1756_v48  ;;  %v1753_v48 = vunpack.c.h.bf16 %v1760_v40 }
 0x12d   : > { %1588 = vmatmul.msk.bf16.gmra.mxu2 %vm834_vm1, %v1696_v49 }
 0x12e   : > { %1540 = vmatmul.msk.bf16.gmra.mxu1 %vm834_vm1, %v1706_v54 }
 0x130   : > { %609 = vmatmul.bf16.gmra.mxu0 %v1687_v59 }
 0x13d   : > { %1589 = vmatmul.msk.bf16.gmra.mxu2 %vm834_vm1, %v1697_v63  ;;  %v2176_v63 = vld [vmem:[%s2214_s3] ss:$0 sm:$0xff] }
 0x13e   : > { %1541 = vmatmul.msk.bf16.gmra.mxu1 %vm834_vm1, %v1707_v4 }
 0x140   : > { %614 = vmatmul.bf16.gmra.mxu0 %v1688_v60 }
 0x14d   : > { %1590 = vmatmul.msk.bf16.gmra.mxu2 %vm834_vm1, %v1698_v13 }
 0x150   : > { %619 = vmatmul.bf16.gmra.mxu0 %v1689_v61 }
 0x160   : > { %624 = vmatmul.bf16.gmra.mxu0 %v1690_v62  ;;  %v1757_v62 = vld [vmem:[%s2211_s0 + $0x20] sm:$0xff]  }
 0x161   : > { %v1740_v1 = vunpack.c.l.bf16 %v1757_v62  ;;  %v1741_v8 = vunpack.c.h.bf16 %v1757_v62 }
 0x170   : > { %629 = vmatmul.bf16.gmra.mxu0 %v1691_v3 }
 0x17d   : > { %v595_v11 = vpop.f32.mrf.mxu0 }
 0x17e   : > { %v655_v12 = vmul.f32 2.0, %v595_v11 }
 0x180   : > { %v687_v14 = vsub.f32 %v655_v12, %v1724_v10  ;;  %v1758_v12 = vld [vmem:[%s2211_s0 + $0x28] sm:$0xff]  }
 0x182   : > { %v703_v15 = vpack.c.bf16 %v687_v14, %v687_v14 }
 0x184   : > { %1480 = vst.msk [vmem:[#allocation2 + $0x40] sm:$0xf] %vm722_vm2, %v703_v15  ;;  %v1744_v15 = vunpack.c.l.bf16 %v1758_v12 }
 0x185   : > { %v597_v17 = vpop.f32.mrf.mxu0 }
 0x186   : > { %v656_v18 = vmul.f32 2.0, %v597_v17 }
 0x188   : > { %v688_v19 = vsub.f32 %v656_v18, %v1725_v16  ;;  %v1708_v18 = vld [vmem:[#allocation2 + $0x30] sm:$0xff] }
 0x189   : > { %1542 = vmatmul.msk.bf16.gmra.mxu1 %vm834_vm1, %v1708_v18 }
 0x18a   : > { %v704_v22 = vpack.c.bf16 %v688_v19, %v688_v19 }
 0x18c   : > { %1481 = vst.msk [vmem:[#allocation2 + $0x44] sm:$0xf] %vm722_vm2, %v704_v22  ;;  %v1745_v22 = vunpack.c.h.bf16 %v1758_v12 }
 0x18d   : > { %v600_v24 = vpop.f32.mrf.mxu0 }
 0x18e   : > { %v657_v25 = vmul.f32 2.0, %v600_v24 }
 0x190   : > { %v689_v27 = vsub.f32 %v657_v25, %v1728_v23 }
 0x192   : > { %v705_v28 = vpack.c.bf16 %v689_v27, %v689_v27  ;;  %v1699_v27 = vld [vmem:[%s2211_s0 + $0x38] sm:$0xff] }
 0x193   : > { %v1712_v29 = vld [vmem:[#allocation2 + $0x40] sm:$0xff]  ;;  %1591 = vmatmul.msk.bf16.gmra.mxu2 %vm834_vm1, %v1699_v27 }
 0x194   : > { %1482 = vst.msk [vmem:[#allocation2 + $0x48] sm:$0xf] %vm722_vm2, %v705_v28  ;;  %1648 = vmatmul.msk.bf16.vlgmr.msra.gmra.mxu3 %vm834_vm1, %v1712_v29  ;;  %v1748_v29 = vunpack.c.l.bf16 %v1759_v26 }
 0x195   : > { %v602_v31 = vpop.f32.mrf.mxu0 }
 0x196   : > { %v658_v32 = vmul.f32 2.0, %v602_v31  ;;  %v1709_v31 = vld [vmem:[#allocation2 + $0x38] sm:$0xff] }
 0x198   : > { %v690_v33 = vsub.f32 %v658_v32, %v1729_v30 }
 0x199   : > { %1543 = vmatmul.msk.bf16.gmra.mxu1 %vm834_vm1, %v1709_v31 }
 0x19a   : > { %v706_v36 = vpack.c.bf16 %v690_v33, %v690_v33 }
 0x19c   : > { %1483 = vst.msk [vmem:[#allocation2 + $0x4c] sm:$0xf] %vm722_vm2, %v706_v36  ;;  %v1749_v36 = vunpack.c.h.bf16 %v1759_v26 }
 0x19d   : > { %v605_v38 = vpop.f32.mrf.mxu0 }
 0x19e   : > { %v659_v39 = vmul.f32 2.0, %v605_v38 }
 0x1a0   : > { %v691_v41 = vsub.f32 %v659_v39, %v1732_v37 }
 0x1a2   : > { %v707_v42 = vpack.c.bf16 %v691_v41, %v691_v41 }
 0x1a3   : > { %v1713_v43 = vld [vmem:[#allocation2 + $0x48] sm:$0xff] }
 0x1a4   : > { %1484 = vst.msk [vmem:[#allocation2 + $0x50] sm:$0xf] %vm722_vm2, %v707_v42  ;;  %1649 = vmatmul.msk.bf16.gmra.mxu3 %vm834_vm1, %v1713_v43  ;;  %v1752_v42 = vunpack.c.l.bf16 %v1760_v40 }
 0x1a5   : > { %v607_v45 = vpop.f32.mrf.mxu0 }
 0x1a6   : > { %v660_v46 = vmul.f32 2.0, %v607_v45 }
 0x1a8   : > { %v692_v47 = vsub.f32 %v660_v46, %v1733_v44 }
 0x1aa   : > { %v708_v50 = vpack.c.bf16 %v692_v47, %v692_v47 }
 0x1ac   : > { %1485 = vst.msk [vmem:[#allocation2 + $0x54] sm:$0xf] %vm722_vm2, %v708_v50  ;;  %v868_v50 = vpop.f32.mrf.mxu1 }
 0x1ad   : > { %v610_v52 = vpop.f32.mrf.mxu0 }
 0x1ae   : > { %v661_v53 = vmul.f32 2.0, %v610_v52  ;;  %v993_v52 = vpop.f32.mrf.mxu2 }
 0x1af   : > { %v994_v62 = vadd.f32 %v993_v52, %v868_v50 }
 0x1b0   : > { %v693_v55 = vsub.f32 %v661_v53, %v1736_v51 }
 0x1b2   : > { %v709_v56 = vpack.c.bf16 %v693_v55, %v693_v55 }
 0x1b3   : > { %v1714_v57 = vld [vmem:[#allocation2 + $0x50] sm:$0xff] }
 0x1b4   : > { %1486 = vst.msk [vmem:[#allocation2 + $0x58] sm:$0xf] %vm722_vm2, %v709_v56  ;;  %1650 = vmatmul.msk.bf16.gmra.mxu3 %vm834_vm1, %v1714_v57  ;;  %v870_v55 = vpop.f32.mrf.mxu1 }
 0x1b5   : > { %v612_v59 = vpop.f32.mrf.mxu0 }
 0x1b6   : > { %v662_v60 = vmul.f32 2.0, %v612_v59  ;;  %v995_v56 = vpop.f32.mrf.mxu2 }
 0x1b8   : > { %v694_v61 = vsub.f32 %v662_v60, %v1737_v58 }
 0x1ba   : > { %v710_v0 = vpack.c.bf16 %v694_v61, %v694_v61 }
 0x1bc   : > { %1487 = vst.msk [vmem:[#allocation2 + $0x5c] sm:$0xf] %vm722_vm2, %v710_v0  ;;  %v873_v58 = vpop.f32.mrf.mxu1 }
 0x1bd   : > { %v615_v2 = vpop.f32.mrf.mxu0 }
 0x1be   : > { %v663_v3 = vmul.f32 2.0, %v615_v2  ;;  %v998_v59 = vpop.f32.mrf.mxu2 }
 0x1c0   : > { %v695_v5 = vsub.f32 %v663_v3, %v1740_v1 }
 0x1c2   : > { %v711_v6 = vpack.c.bf16 %v695_v5, %v695_v5  ;;  %v996_v5 = vadd.f32 %v995_v56, %v870_v55 }
 0x1c3   : > { %v1715_v7 = vld [vmem:[#allocation2 + $0x58] sm:$0xff] }
 0x1c4   : > { %1488 = vst.msk [vmem:[#allocation2 + $0x60] sm:$0xf] %vm722_vm2, %v711_v6  ;;  %1651 = vmatmul.msk.bf16.gmra.mxu3 %vm834_vm1, %v1715_v7  ;;  %v875_v60 = vpop.f32.mrf.mxu1 }
 0x1c5   : > { %v617_v9 = vpop.f32.mrf.mxu0 }
 0x1c6   : > { %v664_v10 = vmul.f32 2.0, %v617_v9  ;;  %v1000_v61 = vpop.f32.mrf.mxu2  ;;  %v999_v9 = vadd.f32 %v998_v59, %v873_v58 }
 0x1c8   : > { %v696_v11 = vsub.f32 %v664_v10, %v1741_v8 }
 0x1ca   : > { %v712_v14 = vpack.c.bf16 %v696_v11, %v696_v11 }
 0x1cc   : > { %1489 = vst.msk [vmem:[#allocation2 + $0x64] sm:$0xf] %vm722_vm2, %v712_v14  ;;  %v878_v3 = vpop.f32.mrf.mxu1 }
 0x1cd   : > { %v620_v16 = vpop.f32.mrf.mxu0 }
 0x1ce   : > { %v665_v17 = vmul.f32 2.0, %v620_v16  ;;  %v1003_v4 = vpop.f32.mrf.mxu2 }
 0x1d0   : > { %v697_v19 = vsub.f32 %v665_v17, %v1744_v15  ;;  %v1001_v15 = vadd.f32 %v1000_v61, %v875_v60 }
 0x1d2   : > { %v713_v20 = vpack.c.bf16 %v697_v19, %v697_v19 }
 0x1d3   : > { %v1716_v21 = vld [vmem:[#allocation2 + $0x60] sm:$0xff] }
 0x1d4   : > { %1490 = vst.msk [vmem:[#allocation2 + $0x68] sm:$0xf] %vm722_vm2, %v713_v20  ;;  %1652 = vmatmul.msk.bf16.gmra.mxu3 %vm834_vm1, %v1716_v21  ;;  %v880_v10 = vpop.f32.mrf.mxu1  ;;  %v1004_v21 = vadd.f32 %v1003_v4, %v878_v3 }
 0x1d5   : > { %v622_v23 = vpop.f32.mrf.mxu0 }
 0x1d6   : > { %v666_v24 = vmul.f32 2.0, %v622_v23  ;;  %v1005_v12 = vpop.f32.mrf.mxu2 }
 0x1d7   : > { %v1006_v27 = vadd.f32 %v1005_v12, %v880_v10 }
 0x1d8   : > { %v698_v25 = vsub.f32 %v666_v24, %v1745_v22 }
 0x1da   : > { %v714_v28 = vpack.c.bf16 %v698_v25, %v698_v25 }
 0x1dc   : > { %1491 = vst.msk [vmem:[#allocation2 + $0x6c] sm:$0xf] %vm722_vm2, %v714_v28  ;;  %v883_v18 = vpop.f32.mrf.mxu1 }
 0x1dd   : > { %v625_v30 = vpop.f32.mrf.mxu0 }
 0x1de   : > { %v667_v32 = vmul.f32 2.0, %v625_v30  ;;  %v1008_v19 = vpop.f32.mrf.mxu2 }
 0x1df   : > { %v1009_v31 = vadd.f32 %v1008_v19, %v883_v18 }
 0x1e0   : > { %v699_v33 = vsub.f32 %v667_v32, %v1748_v29 }
 0x1e2   : > { %v715_v34 = vpack.c.bf16 %v699_v33, %v699_v33 }
 0x1e3   : > { %v1717_v35 = vld [vmem:[#allocation2 + $0x68] sm:$0xff] }
 0x1e4   : > { %1492 = vst.msk [vmem:[#allocation2 + $0x70] sm:$0xf] %vm722_vm2, %v715_v34  ;;  %1653 = vmatmul.msk.bf16.gmra.mxu3 %vm834_vm1, %v1717_v35  ;;  %v885_v25 = vpop.f32.mrf.mxu1 }
 0x1e5   : > { %v627_v37 = vpop.f32.mrf.mxu0 }
 0x1e6   : > { %v668_v38 = vmul.f32 2.0, %v627_v37  ;;  %v1010_v26 = vpop.f32.mrf.mxu2 }
 0x1e7   : > { %v1011_v37 = vadd.f32 %v1010_v26, %v885_v25 }
 0x1e8   : > { %v700_v39 = vsub.f32 %v668_v38, %v1749_v36 }
 0x1ea   : > { %v716_v41 = vpack.c.bf16 %v700_v39, %v700_v39 }
 0x1ec   : > { %1493 = vst.msk [vmem:[#allocation2 + $0x74] sm:$0xf] %vm722_vm2, %v716_v41  ;;  %v888_v32 = vpop.f32.mrf.mxu1 }
 0x1ed   : > { %v630_v43 = vpop.f32.mrf.mxu0 }
 0x1ee   : > { %v669_v44 = vmul.f32 2.0, %v630_v43  ;;  %v1013_v33 = vpop.f32.mrf.mxu2 }
 0x1ef   : > { %v1014_v43 = vadd.f32 %v1013_v33, %v888_v32 }
 0x1f0   : > { %v701_v45 = vsub.f32 %v669_v44, %v1752_v42 }
 0x1f2   : > { %v717_v46 = vpack.c.bf16 %v701_v45, %v701_v45 }
 0x1f3   : > { %v1718_v47 = vld [vmem:[#allocation2 + $0x70] sm:$0xff] }
 0x1f4   : > { %1494 = vst.msk [vmem:[#allocation2 + $0x78] sm:$0xf] %vm722_vm2, %v717_v46  ;;  %1654 = vmatmul.msk.bf16.gmra.mxu3 %vm834_vm1, %v1718_v47  ;;  %v890_v38 = vpop.f32.mrf.mxu1 }
 0x1f5   : > { %v632_v49 = vpop.f32.mrf.mxu0 }
 0x1f6   : > { %v670_v51 = vmul.f32 2.0, %v632_v49  ;;  %v1015_v40 = vpop.f32.mrf.mxu2 }
 0x1f7   : > { %v1016_v49 = vadd.f32 %v1015_v40, %v890_v38 }
 0x1f8   : > { %v702_v53 = vsub.f32 %v670_v51, %v1753_v48 }
 0x1fa   : > { %v718_v54 = vpack.c.bf16 %v702_v53, %v702_v53 }
 0x1fc   : > { %1495 = vst.msk [vmem:[#allocation2 + $0x7c] sm:$0xf] %vm722_vm2, %v718_v54  ;;  %v893_v46 = vpop.f32.mrf.mxu1 }
 0x1fe   : > { %v1018_v47 = vpop.f32.mrf.mxu2 }
 0x1ff   : > { %v1019_v55 = vadd.f32 %v1018_v47, %v893_v46 }
 0x203   : > { %v1719_v57 = vld [vmem:[#allocation2 + $0x78] sm:$0xff] }
 0x204   : > { %1655 = vmatmul.msk.bf16.gmra.mxu3 %vm834_vm1, %v1719_v57  ;;  %v895_v53 = vpop.f32.mrf.mxu1 }
 0x206   : > { %v1020_v54 = vpop.f32.mrf.mxu2 }
 0x207   : > { %v1021_v61 = vadd.f32 %v1020_v54, %v895_v53 }
 0x20c   : > { %v898_v59 = vpop.f32.mrf.mxu1 }
 0x20e   : > { %v1023_v60 = vpop.f32.mrf.mxu2 }
 0x214   : > { %v900_v3 = vpop.f32.mrf.mxu1 }
 0x216   : > { %v1025_v4 = vpop.f32.mrf.mxu2 }
 0x217   : > { %v1139_v0 = vpop.f32.mrf.mxu3 }
 0x218   : > { %v1179_v1 = vadd.f32 %v1139_v0, %v994_v62 }
 0x21a   : > { %v1199_v2 = vadd.f32 %v2176_v63, %v1179_v1 }
 0x21c   : > { %1215 = vst [vmem:[#allocation6] sm:$0xff] %v1199_v2  ;;  %v1024_v2 = vadd.f32 %v1023_v60, %v898_v59 }
 0x21e   : > { %v1028_v12 = vpop.f32.mrf.mxu2 }
 0x21f   : > { %v1141_v6 = vpop.f32.mrf.mxu3 }
 0x220   : > { %v1180_v7 = vadd.f32 %v1141_v6, %v996_v5 }
 0x222   : > { %v1200_v8 = vadd.f32 %v2176_v63, %v1180_v7 }
 0x224   : > { %1216 = vst [vmem:[#allocation6 + $0x8] sm:$0xff] %v1200_v8  ;;  %v1026_v8 = vadd.f32 %v1025_v4, %v900_v3 }
 0x226   : > { %v1030_v19 = vpop.f32.mrf.mxu2 }
 0x227   : > { %v1144_v11 = vpop.f32.mrf.mxu3 }
 0x228   : > { %v1181_v13 = vadd.f32 %v1144_v11, %v999_v9  ;;  %v903_v11 = vpop.f32.mrf.mxu1 }
 0x22a   : > { %v1201_v14 = vadd.f32 %v2176_v63, %v1181_v13 }
 0x22c   : > { %1217 = vst [vmem:[#allocation6 + $0x10] sm:$0xff] %v1201_v14  ;;  %v1029_v14 = vadd.f32 %v1028_v12, %v903_v11 }
 0x22f   : > { %v1146_v16 = vpop.f32.mrf.mxu3 }
 0x230   : > { %v1182_v17 = vadd.f32 %v1146_v16, %v1001_v15  ;;  %v905_v18 = vpop.f32.mrf.mxu1 }
 0x232   : > { %v1202_v20 = vadd.f32 %v2176_v63, %v1182_v17 }
 0x234   : > { %1218 = vst [vmem:[#allocation6 + $0x18] sm:$0xff] %v1202_v20  ;;  %v1031_v20 = vadd.f32 %v1030_v19, %v905_v18 }
 0x237   : > { %v1149_v22 = vpop.f32.mrf.mxu3 }
 0x238   : > { %v1183_v23 = vadd.f32 %v1149_v22, %v1004_v21 }
 0x23a   : > { %v1203_v24 = vadd.f32 %v2176_v63, %v1183_v23 }
 0x23c   : > { %1219 = vst [vmem:[#allocation6 + $0x20] sm:$0xff] %v1203_v24 }
 0x23f   : > { %v1151_v28 = vpop.f32.mrf.mxu3 }
 0x240   : > { %v1184_v29 = vadd.f32 %v1151_v28, %v1006_v27 }
 0x242   : > { %v1204_v30 = vadd.f32 %v2176_v63, %v1184_v29 }
 0x244   : > { %1220 = vst [vmem:[#allocation6 + $0x28] sm:$0xff] %v1204_v30 }
 0x247   : > { %v1154_v34 = vpop.f32.mrf.mxu3 }
 0x248   : > { %v1185_v35 = vadd.f32 %v1154_v34, %v1009_v31 }
 0x24a   : > { %v1205_v36 = vadd.f32 %v2176_v63, %v1185_v35 }
 0x24c   : > { %1221 = vst [vmem:[#allocation6 + $0x30] sm:$0xff] %v1205_v36 }
 0x24f   : > { %v1156_v39 = vpop.f32.mrf.mxu3 }
 0x250   : > { %v1186_v41 = vadd.f32 %v1156_v39, %v1011_v37 }
 0x252   : > { %v1206_v42 = vadd.f32 %v2176_v63, %v1186_v41 }
 0x254   : > { %1222 = vst [vmem:[#allocation6 + $0x38] sm:$0xff] %v1206_v42 }
 0x257   : > { %v1159_v44 = vpop.f32.mrf.mxu3 }
 0x258   : > { %v1187_v45 = vadd.f32 %v1159_v44, %v1014_v43 }
 0x25a   : > { %v1207_v48 = vadd.f32 %v2176_v63, %v1187_v45 }
 0x25c   : > { %1223 = vst [vmem:[#allocation6 + $0x40] sm:$0xff] %v1207_v48 }
 0x25f   : > { %v1161_v50 = vpop.f32.mrf.mxu3 }
 0x260   : > { %v1188_v51 = vadd.f32 %v1161_v50, %v1016_v49 }
 0x262   : > { %v1208_v52 = vadd.f32 %v2176_v63, %v1188_v51 }
 0x264   : > { %1224 = vst [vmem:[#allocation6 + $0x48] sm:$0xff] %v1208_v52 }
 0x267   : > { %v1164_v56 = vpop.f32.mrf.mxu3 }
 0x268   : > { %v1189_v57 = vadd.f32 %v1164_v56, %v1019_v55 }
 0x26a   : > { %v1209_v58 = vadd.f32 %v2176_v63, %v1189_v57 }
 0x26c   : > { %1225 = vst [vmem:[#allocation6 + $0x50] sm:$0xff] %v1209_v58 }
 0x26f   : > { %v1166_v62 = vpop.f32.mrf.mxu3 }
 0x270   : > { %v1190_v0 = vadd.f32 %v1166_v62, %v1021_v61 }
 0x272   : > { %v1210_v1 = vadd.f32 %v2176_v63, %v1190_v0 }
 0x274   : > { %1226 = vst [vmem:[#allocation6 + $0x58] sm:$0xff] %v1210_v1 }
 0x277   : > { %v1169_v5 = vpop.f32.mrf.mxu3 }
 0x278   : > { %v1191_v6 = vadd.f32 %v1169_v5, %v1024_v2 }
 0x27a   : > { %v1211_v7 = vadd.f32 %v2176_v63, %v1191_v6 }
 0x27c   : > { %1227 = vst [vmem:[#allocation6 + $0x60] sm:$0xff] %v1211_v7 }
 0x27f   : > { %v1171_v9 = vpop.f32.mrf.mxu3 }
 0x280   : > { %v1192_v10 = vadd.f32 %v1171_v9, %v1026_v8 }
 0x282   : > { %v1212_v13 = vadd.f32 %v2176_v63, %v1192_v10 }
 0x284   : > { %1228 = vst [vmem:[#allocation6 + $0x68] sm:$0xff] %v1212_v13 }
 0x287   : > { %v1174_v15 = vpop.f32.mrf.mxu3 }
 0x288   : > { %v1193_v16 = vadd.f32 %v1174_v15, %v1029_v14 }
 0x28a   : > { %v1213_v17 = vadd.f32 %v2176_v63, %v1193_v16 }
 0x28c   : > { %1229 = vst [vmem:[#allocation6 + $0x70] sm:$0xff] %v1213_v17 }
 0x28f   : > { %v1176_v21 = vpop.f32.mrf.mxu3 }
 0x290   : > { %v1194_v22 = vadd.f32 %v1176_v21, %v1031_v20 }
 0x292   : > { %v1214_v23 = vadd.f32 %v2176_v63, %v1194_v22 }
 0x294   : > { %1230 = vst [vmem:[#allocation6 + $0x78] sm:$0xff] %v1214_v23 }
 0x295 PF: > { %p1803_p9 = scmp.eq.s32.totalorder %s1343_s18, 1  ;;  %s1248_s30 = sshll.u32 %s2215_s4, 4  ;;  %s1249_s30 = int_to_ptr.hbm [resolvable:$true] %s1248_s30 }
 0x296   : > { %s1930_s5 = smov [#allocation6]   ;;  %s1931_s7 = smov 128  }
 0x297   : > { %s1246_s6 = sshll.u32 %s1930_s5, 4  ;;  %s1932_s8 = smov 8   ;;  %s1247_s6 = int_to_ptr.vmem [resolvable:$true] %s1246_s6 }
 0x298   : > { %1790 = dma.vmem_to_hbm [thread:$0]  (%p1803_p9), %s1247_s6, 2048, %s1249_s30, [#allocation5], %s1931_s7, %s1931_s7, %s1932_s8  }
 0x299 PF: > { %p1804_p10 = scmp.ge.s32.totalorder %s1925_s17, 2  ;;  %p1805_p11 = scmp.eq.s32.totalorder %s1344_s19, 1 }
 0x29b   : > { %p1798_p12 = pnand %p1805_p11, %p1804_p10 }
 0x29d   : > { %p1799_p13 = pneg %p1798_p12 }
 0x29f   : > { %1912 = dma.done.wait (%p1799_p13), [#allocation5], 2048  }
 0x2a0   : > { %1914 = vsyncadd (%p1799_p13), [#allocation5], 4294965248  ;;  %s18_s17 = sadd.s32 1, %s1925_s17   ;;  %s2217_s15 = smov %s1921_s16 }
 0x2a1   : > { %p15_p0 = scmp.ge.s32.totalorder %s18_s17, 4   ;;  %s2218_s16 = smov %s2220_s20 }
 0x2a3   :  { %17 = sbr.rel (!%p15_p0) target bundleno = 4 (0x4), region = 90 }
 0x2a8   :  { %1270 = vsyncpa [#allocation4], 1 }
 0x2a9   :  { %1272 = vsyncpa [#allocation4 + $0x1], 1 }
 0x2aa   :  { %1273 = vsyncpa [#allocation5], 1 }
 0x2ab   :  { %1275 = vsyncpa [#allocation5 + $0x1], 1 }

</bundles_post_ra>
